<compile_context>
chip_gen: v5e
topology: v5e:2x2
jax: 0.10.0
libtpu: 0.0.40
codegen_flags: <defaults>
</compile_context>

<pallas_src>
import functools

import jax
import jax.numpy as jnp
from jax.experimental import pallas as pl
from jax.experimental.pallas import tpu as pltpu


_TARGET_TILE_VMEM_BYTES = 4 * 1024 * 1024   # per-input tile (padded VMEM footprint)
_MIN_GRID_STEPS = 4                          # >= 2 x TensorCores on v7x


def _vmem_limit_bytes():
    try:
        cap = pltpu.get_tpu_info().vmem_capacity_bytes
        return int(cap * 3 // 4)             # 96 MiB on v5e/v6e, 48 MiB on v7x
    except Exception:
        return 48 * 1024 * 1024              # safe on every generation


def _lane_rowsum(x):
    """(tb, rows, L) -> (1, L): sum over planes and rows, keep the lane axis."""
    return jnp.sum(jnp.sum(x, axis=0), axis=0, keepdims=True)


# ----------------------------------------------------------------------------
# Kernels: per-block per-lane partial sums.  Output block is (1, 4, L):
#   row 0 = sum d^2, row 1 = sum |dH| (in-tile), row 2 = sum |dW|,
#   row 3 = sum |dH| (across packed-row seams; zero in the fallback layout).
# ----------------------------------------------------------------------------
def _packed_loss_kernel(p_ref, t_ref, out_ref, *, nc, tb, W, R, needs_mask):
    """Block (tb, R, 128): each packed row holds G = 128 // W consecutive image rows."""
    d = p_ref[...].astype(jnp.float32) - t_ref[...].astype(jnp.float32)
    if needs_mask:
        rem = nc - pl.program_id(0) * tb
        plane = jax.lax.broadcasted_iota(jnp.int32, d.shape, 0)
        d = jnp.where(plane < rem, d, 0.0)

    zeros_row = jnp.zeros((1, 128), jnp.float32)

    # Row 0: sum of squares (MSE partial).
    out_ref[0, 0:1, :] = _lane_rowsum(d * d)

    # Row 1: |d/dH| within a packed row: lane l vs l + W is image row g vs g + 1,
    # same column -- all 128 - W pairs are valid.
    dx_in = jnp.abs(d[:, :, W:] - d[:, :, :128 - W])            # (tb, R, 128 - W)
    out_ref[0, 1:2, :] = zeros_row
    out_ref[0, 1:2, :128 - W] = _lane_rowsum(dx_in)

    # Row 2: |d/dW|: adjacent lanes, masked at the W-group seams.
    adj = jnp.abs(d[:, :, 1:] - d[:, :, :-1])                   # (tb, R, 127)
    lane = jax.lax.broadcasted_iota(jnp.int32, adj.shape, 2)
    dy = jnp.where(lane % W < W - 1, adj, 0.0)
    out_ref[0, 2:3, :] = zeros_row
    out_ref[0, 2:3, :127] = _lane_rowsum(dy)

    # Row 3: |d/dH| across packed-row seams: last image row of packed row r vs
    # first image row of packed row r + 1.
    out_ref[0, 3:4, :] = zeros_row
    if R > 1:
        seam = jnp.abs(d[:, 1:, :W] - d[:, :-1, 128 - W:])      # (tb, R - 1, W)
        out_ref[0, 3:4, :W] = _lane_rowsum(seam)


def _plane_loss_kernel(p_ref, t_ref, out_ref, *, nc, tb, needs_mask):
    """Fallback layout: block (tb, H, W), one image row per sublane row."""
    d = p_ref[...].astype(jnp.float32) - t_ref[...].astype(jnp.float32)
    if needs_mask:
        rem = nc - pl.program_id(0) * tb
        plane = jax.lax.broadcasted_iota(jnp.int32, d.shape, 0)
        d = jnp.where(plane < rem, d, 0.0)
    W = d.shape[-1]
    zeros_row = jnp.zeros((1, W), jnp.float32)

    out_ref[0, 0:1, :] = _lane_rowsum(d * d)
    dx = jnp.abs(d[:, 1:, :] - d[:, :-1, :])                    # (tb, H - 1, W)
    out_ref[0, 1:2, :] = _lane_rowsum(dx)
    dy = jnp.abs(d[:, :, 1:] - d[:, :, :-1])                    # (tb, H, W - 1)
    out_ref[0, 2:3, :] = zeros_row
    out_ref[0, 2:3, :W - 1] = _lane_rowsum(dy)
    out_ref[0, 3:4, :] = zeros_row


# ----------------------------------------------------------------------------
# Wrapper: one fused pass over (N, C, H, W) -> (sum_sq, sum_|dH|, sum_|dW|).
# ----------------------------------------------------------------------------
def _loss_partial_sums(predict, target):
    assert predict.shape == target.shape, (predict.shape, target.shape)
    assert predict.ndim == 4, predict.shape
    N, C, H, W = predict.shape
    assert H >= 2 and W >= 2, "gradient loss needs H >= 2 and W >= 2"
    nc = N * C

    packable = (W < 128) and (128 % W == 0) and (H % (128 // W) == 0)
    if packable:
        rows, lanes = (H * W) // 128, 128    # free row-major regrouping of (H, W)
    else:
        rows, lanes = H, W
    p = predict.reshape(nc, rows, lanes)
    t = target.reshape(nc, rows, lanes)

    # Tile sizing from the (8,128)-padded VMEM footprint of one plane.
    plane_vmem = (-(-rows // 8) * 8) * (-(-lanes // 128) * 128) * p.dtype.itemsize
    tb = max(1, min(nc, _TARGET_TILE_VMEM_BYTES // max(plane_vmem, 1)))
    tb = max(1, min(tb, pl.cdiv(nc, _MIN_GRID_STEPS)))   # keep both v7x TCs busy
    grid_n = pl.cdiv(nc, tb)
    needs_mask = (nc % tb) != 0

    if packable:
        kernel = functools.partial(_packed_loss_kernel, nc=nc, tb=tb, W=W,
                                   R=rows, needs_mask=needs_mask)
    else:
        kernel = functools.partial(_plane_loss_kernel, nc=nc, tb=tb,
                                   needs_mask=needs_mask)

    elems = nc * H * W
    partials = pl.pallas_call(
        kernel,
        out_shape=jax.ShapeDtypeStruct((grid_n, 4, lanes), jnp.float32),
        grid_spec=pltpu.PrefetchScalarGridSpec(
            num_scalar_prefetch=0,
            grid=(grid_n,),
            in_specs=[pl.BlockSpec((tb, rows, lanes), lambda i: (i, 0, 0)),
                      pl.BlockSpec((tb, rows, lanes), lambda i: (i, 0, 0))],
            out_specs=pl.BlockSpec((1, 4, lanes), lambda i: (i, 0, 0)),
        ),
        compiler_params=pltpu.CompilerParams(
            dimension_semantics=("parallel",),
            vmem_limit_bytes=_vmem_limit_bytes(),
        ),
        cost_estimate=pl.CostEstimate(
            flops=12 * elems, transcendentals=0,
            bytes_accessed=2 * elems * p.dtype.itemsize + grid_n * 4 * lanes * 4),
    )(p, t)

    sums = jnp.sum(partials, axis=(0, 2))                # (4,)
    return sums[0], sums[1] + sums[3], sums[2]


# ----------------------------------------------------------------------------
# Constituent losses + combiners (ERRNet: nn.MSELoss, GradientLoss).
# ----------------------------------------------------------------------------
def _mse_from_sums(sums, shape):
    N, C, H, W = shape
    return sums[0] / jnp.float32(N * C * H * W)


def _gradient_from_sums(sums, shape):
    N, C, H, W = shape
    return (sums[1] / jnp.float32(N * C * (H - 1) * W)
            + sums[2] / jnp.float32(N * C * H * (W - 1)))


def mse_loss(predict, target):
    return _mse_from_sums(_loss_partial_sums(predict, target), predict.shape)


def gradient_loss(predict, target):
    return _gradient_from_sums(_loss_partial_sums(predict, target), predict.shape)


_FUSED_COMBINERS = {mse_loss: _mse_from_sums, gradient_loss: _gradient_from_sums}


class MultipleLoss:
    """Weighted sum of losses -- mirrors ERRNet MultipleLoss.forward."""

    def __init__(self, losses=None, weight=None):
        self.losses = list(losses) if losses is not None else [mse_loss,
                                                               gradient_loss]
        self.weight = (list(weight) if weight is not None
                       else [1.0 / len(self.losses)] * len(self.losses))

    def __call__(self, predict, target):
        total = jnp.float32(0.0)
        if all(l in _FUSED_COMBINERS for l in self.losses):
            # Structurally guaranteed single HBM pass for the fused losses.
            sums = _loss_partial_sums(predict, target)
            for w, loss in zip(self.weight, self.losses):
                total = total + _FUSED_COMBINERS[loss](sums, predict.shape) * jnp.float32(w)
            return total
        # Generic fallback: user-supplied JAX-callable losses.
        for w, loss in zip(self.weight, self.losses):
            total = total + loss(predict, target) * jnp.float32(w)
        return total


# ----------------------------------------------------------------------------
# Pure-JAX reference mirroring the PyTorch modules.
# ----------------------------------------------------------------------------
def multiple_loss_ref(predict, target, weight=(0.5, 0.5)):
    mse = jnp.mean((predict - target) ** 2)
    p_gx = predict[..., 1:, :] - predict[..., :-1, :]
    p_gy = predict[..., 1:] - predict[..., :-1]
    t_gx = target[..., 1:, :] - target[..., :-1, :]
    t_gy = target[..., 1:] - target[..., :-1]
    grad = jnp.mean(jnp.abs(p_gx - t_gx)) + jnp.mean(jnp.abs(p_gy - t_gy))
    return weight[0] * mse + weight[1] * grad


if __name__ == "__main__":
    key = jax.random.PRNGKey(0)
    k1, k2 = jax.random.split(key)
    N, C, H, W = 2, 4, 16, 16
    predict = jax.random.normal(k1, (N, C, H, W), dtype=jnp.float32)
    target = jax.random.normal(k2, (N, C, H, W), dtype=jnp.float32)

    loss_fn = MultipleLoss()  # default: [MSE, GradientLoss], weights [0.5, 0.5]
    loss = jax.jit(lambda p, t: loss_fn(p, t))(predict, target)
    jax.block_until_ready(loss)

    ref = multiple_loss_ref(predict, target)
    assert jnp.allclose(loss, ref, rtol=1e-5, atol=1e-5), (loss, ref)

    print("KERNEL_OK")
</pallas_src>

<mosaic_0001>
module attributes {stable_mosaic.version = 11 : i64} {
  func.func @_packed_loss_kernel(%arg0: i32, %arg1: memref<2x2x128xf32, #tpu.memory_space<vmem>>, %arg2: memref<2x2x128xf32, #tpu.memory_space<vmem>>, %arg3: memref<1x4x128xf32, #tpu.memory_space<vmem>>) attributes {dimension_semantics = [#tpu.dimension_semantics<parallel>], iteration_bounds = array<i64: 4>, scalar_prefetch = 0 : i64, scratch_operands = 0 : i64, tpu.core_type = #tpu.core_type<tc>, window_params = [{transform_indices = @transform_0, window_bounds = array<i64: 2, 2, 128>}, {transform_indices = @transform_1, window_bounds = array<i64: 2, 2, 128>}, {transform_indices = @transform_2, window_bounds = array<i64: 1, 4, 128>}]} {
    %c0 = arith.constant 0 : index
    %c0_0 = arith.constant 0 : index
    %c0_1 = arith.constant 0 : index
    %0 = vector.load %arg1[%c0, %c0_0, %c0_1] : memref<2x2x128xf32, #tpu.memory_space<vmem>>, vector<2x2x128xf32>
    %c0_2 = arith.constant 0 : index
    %c0_3 = arith.constant 0 : index
    %c0_4 = arith.constant 0 : index
    %1 = vector.load %arg2[%c0_2, %c0_3, %c0_4] : memref<2x2x128xf32, #tpu.memory_space<vmem>>, vector<2x2x128xf32>
    %2 = arith.subf %0, %1 : vector<2x2x128xf32>
    %cst = arith.constant 0.000000e+00 : f32
    %3 = vector.broadcast %cst : f32 to vector<1x128xf32>
    %4 = arith.mulf %2, %2 : vector<2x2x128xf32>
    %cst_5 = arith.constant dense<0.000000e+00> : vector<2x128xf32>
    %5 = vector.multi_reduction <add>, %4, %cst_5 [0] : vector<2x2x128xf32> to vector<2x128xf32>
    %cst_6 = arith.constant dense<0.000000e+00> : vector<128xf32>
    %6 = vector.multi_reduction <add>, %5, %cst_6 [0] : vector<2x128xf32> to vector<128xf32>
    %7 = vector.shape_cast %6 : vector<128xf32> to vector<1x128xf32>
    %c0_7 = arith.constant 0 : index
    %c0_8 = arith.constant 0 : index
    %c0_9 = arith.constant 0 : index
    %8 = vector.load %arg3[%c0_7, %c0_8, %c0_9] : memref<1x4x128xf32, #tpu.memory_space<vmem>>, vector<1x1x128xf32>
    %9 = vector.shape_cast %8 : vector<1x1x128xf32> to vector<1x128xf32>
    %10 = vector.shape_cast %7 : vector<1x128xf32> to vector<1x1x128xf32>
    tpu.vector_store %arg3[%c0_7, %c0_8, %c0_9], %10 {strides = array<i32>} : memref<1x4x128xf32, #tpu.memory_space<vmem>>, vector<1x1x128xf32>,
    %11 = vector.extract_strided_slice %2 {offsets = [0, 0, 16], sizes = [2, 2, 112], strides = [1, 1, 1]} : vector<2x2x128xf32> to vector<2x2x112xf32>
    %12 = vector.extract_strided_slice %2 {offsets = [0, 0, 0], sizes = [2, 2, 112], strides = [1, 1, 1]} : vector<2x2x128xf32> to vector<2x2x112xf32>
    %13 = arith.subf %11, %12 : vector<2x2x112xf32>
    %14 = math.absf %13 : vector<2x2x112xf32>
    %c0_10 = arith.constant 0 : index
    %c1 = arith.constant 1 : index
    %c0_11 = arith.constant 0 : index
    %15 = vector.load %arg3[%c0_10, %c1, %c0_11] : memref<1x4x128xf32, #tpu.memory_space<vmem>>, vector<1x1x128xf32>
    %16 = vector.shape_cast %15 : vector<1x1x128xf32> to vector<1x128xf32>
    %17 = vector.shape_cast %3 : vector<1x128xf32> to vector<1x1x128xf32>
    tpu.vector_store %arg3[%c0_10, %c1, %c0_11], %17 {strides = array<i32>} : memref<1x4x128xf32, #tpu.memory_space<vmem>>, vector<1x1x128xf32>,
    %cst_12 = arith.constant dense<0.000000e+00> : vector<2x112xf32>
    %18 = vector.multi_reduction <add>, %14, %cst_12 [0] : vector<2x2x112xf32> to vector<2x112xf32>
    %cst_13 = arith.constant dense<0.000000e+00> : vector<112xf32>
    %19 = vector.multi_reduction <add>, %18, %cst_13 [0] : vector<2x112xf32> to vector<112xf32>
    %20 = vector.shape_cast %19 : vector<112xf32> to vector<1x112xf32>
    %c0_14 = arith.constant 0 : index
    %c1_15 = arith.constant 1 : index
    %c0_16 = arith.constant 0 : index
    %21 = vector.load %arg3[%c0_14, %c1_15, %c0_16] : memref<1x4x128xf32, #tpu.memory_space<vmem>>, vector<1x1x112xf32>
    %22 = vector.shape_cast %21 : vector<1x1x112xf32> to vector<1x112xf32>
    %23 = vector.shape_cast %20 : vector<1x112xf32> to vector<1x1x112xf32>
    tpu.vector_store %arg3[%c0_14, %c1_15, %c0_16], %23 {strides = array<i32>} : memref<1x4x128xf32, #tpu.memory_space<vmem>>, vector<1x1x112xf32>,
    %24 = vector.extract_strided_slice %2 {offsets = [0, 0, 1], sizes = [2, 2, 127], strides = [1, 1, 1]} : vector<2x2x128xf32> to vector<2x2x127xf32>
    %25 = vector.extract_strided_slice %2 {offsets = [0, 0, 0], sizes = [2, 2, 127], strides = [1, 1, 1]} : vector<2x2x128xf32> to vector<2x2x127xf32>
    %26 = arith.subf %24, %25 : vector<2x2x127xf32>
    %27 = math.absf %26 : vector<2x2x127xf32>
    %28 = tpu.iota {dimensions = array<i32: 2>} : vector<2x2x127xi32>
    %c16_i32 = arith.constant 16 : i32
    %c0_i32 = arith.constant 0 : i32
    %29 = arith.cmpi eq, %c16_i32, %c0_i32 : i32
    %c1_i32 = arith.constant 1 : i32
    %30 = arith.select %29, %c1_i32, %c16_i32 : i32
    %31 = vector.broadcast %30 : i32 to vector<2x2x127xi32>
    %32 = arith.remsi %28, %31 : vector<2x2x127xi32>
    %c0_i32_17 = arith.constant 0 : i32
    %33 = vector.broadcast %c0_i32_17 : i32 to vector<2x2x127xi32>
    %34 = arith.cmpi ne, %32, %33 : vector<2x2x127xi32>
    %c0_i32_18 = arith.constant 0 : i32
    %35 = vector.broadcast %c0_i32_18 : i32 to vector<2x2x127xi32>
    %36 = arith.cmpi slt, %32, %35 : vector<2x2x127xi32>
    %c0_i32_19 = arith.constant 0 : i32
    %37 = arith.cmpi slt, %30, %c0_i32_19 : i32
    %38 = vector.broadcast %37 : i1 to vector<2x2x127xi1>
    %39 = vector.broadcast %38 : vector<2x2x127xi1> to vector<2x2x127xi1>
    %40 = arith.xori %36, %39 : vector<2x2x127xi1>
    %41 = arith.andi %40, %34 : vector<2x2x127xi1>
    %42 = vector.broadcast %30 : i32 to vector<2x2x127xi32>
    %43 = arith.addi %32, %42 : vector<2x2x127xi32>
    %44 = arith.select %41, %43, %32 : vector<2x2x127xi1>, vector<2x2x127xi32>
    %c15_i32 = arith.constant 15 : i32
    %45 = vector.broadcast %c15_i32 : i32 to vector<2x2x127xi32>
    %46 = arith.cmpi slt, %44, %45 : vector<2x2x127xi32>
    %cst_20 = arith.constant 0.000000e+00 : f32
    %47 = vector.broadcast %cst_20 : f32 to vector<2x2x127xf32>
    %48 = arith.select %46, %27, %47 : vector<2x2x127xi1>, vector<2x2x127xf32>
    %c0_21 = arith.constant 0 : index
    %c2 = arith.constant 2 : index
    %c0_22 = arith.constant 0 : index
    %49 = vector.load %arg3[%c0_21, %c2, %c0_22] : memref<1x4x128xf32, #tpu.memory_space<vmem>>, vector<1x1x128xf32>
    %50 = vector.shape_cast %49 : vector<1x1x128xf32> to vector<1x128xf32>
    %51 = vector.shape_cast %3 : vector<1x128xf32> to vector<1x1x128xf32>
    tpu.vector_store %arg3[%c0_21, %c2, %c0_22], %51 {strides = array<i32>} : memref<1x4x128xf32, #tpu.memory_space<vmem>>, vector<1x1x128xf32>,
    %cst_23 = arith.constant dense<0.000000e+00> : vector<2x127xf32>
    %52 = vector.multi_reduction <add>, %48, %cst_23 [0] : vector<2x2x127xf32> to vector<2x127xf32>
    %cst_24 = arith.constant dense<0.000000e+00> : vector<127xf32>
    %53 = vector.multi_reduction <add>, %52, %cst_24 [0] : vector<2x127xf32> to vector<127xf32>
    %54 = vector.shape_cast %53 : vector<127xf32> to vector<1x127xf32>
    %c0_25 = arith.constant 0 : index
    %c2_26 = arith.constant 2 : index
    %c0_27 = arith.constant 0 : index
    %55 = vector.load %arg3[%c0_25, %c2_26, %c0_27] : memref<1x4x128xf32, #tpu.memory_space<vmem>>, vector<1x1x127xf32>
    %56 = vector.shape_cast %55 : vector<1x1x127xf32> to vector<1x127xf32>
    %57 = vector.shape_cast %54 : vector<1x127xf32> to vector<1x1x127xf32>
    tpu.vector_store %arg3[%c0_25, %c2_26, %c0_27], %57 {strides = array<i32>} : memref<1x4x128xf32, #tpu.memory_space<vmem>>, vector<1x1x127xf32>,
    %c0_28 = arith.constant 0 : index
    %c3 = arith.constant 3 : index
    %c0_29 = arith.constant 0 : index
    %58 = vector.load %arg3[%c0_28, %c3, %c0_29] : memref<1x4x128xf32, #tpu.memory_space<vmem>>, vector<1x1x128xf32>
    %59 = vector.shape_cast %58 : vector<1x1x128xf32> to vector<1x128xf32>
    %60 = vector.shape_cast %3 : vector<1x128xf32> to vector<1x1x128xf32>
    tpu.vector_store %arg3[%c0_28, %c3, %c0_29], %60 {strides = array<i32>} : memref<1x4x128xf32, #tpu.memory_space<vmem>>, vector<1x1x128xf32>,
    %61 = vector.extract_strided_slice %2 {offsets = [0, 1, 0], sizes = [2, 1, 16], strides = [1, 1, 1]} : vector<2x2x128xf32> to vector<2x1x16xf32>
    %62 = vector.extract_strided_slice %2 {offsets = [0, 0, 112], sizes = [2, 1, 16], strides = [1, 1, 1]} : vector<2x2x128xf32> to vector<2x1x16xf32>
    %63 = arith.subf %61, %62 : vector<2x1x16xf32>
    %64 = math.absf %63 : vector<2x1x16xf32>
    %cst_30 = arith.constant dense<0.000000e+00> : vector<1x16xf32>
    %65 = vector.multi_reduction <add>, %64, %cst_30 [0] : vector<2x1x16xf32> to vector<1x16xf32>
    %cst_31 = arith.constant dense<0.000000e+00> : vector<16xf32>
    %66 = vector.multi_reduction <add>, %65, %cst_31 [0] : vector<1x16xf32> to vector<16xf32>
    %67 = vector.shape_cast %66 : vector<16xf32> to vector<1x16xf32>
    %c0_32 = arith.constant 0 : index
    %c3_33 = arith.constant 3 : index
    %c0_34 = arith.constant 0 : index
    %68 = vector.load %arg3[%c0_32, %c3_33, %c0_34] : memref<1x4x128xf32, #tpu.memory_space<vmem>>, vector<1x1x16xf32>
    %69 = vector.shape_cast %68 : vector<1x1x16xf32> to vector<1x16xf32>
    %70 = vector.shape_cast %67 : vector<1x16xf32> to vector<1x1x16xf32>
    tpu.vector_store %arg3[%c0_32, %c3_33, %c0_34], %70 {strides = array<i32>} : memref<1x4x128xf32, #tpu.memory_space<vmem>>, vector<1x1x16xf32>,
    return
  }
  func.func @transform_0(%arg0: i32) -> (i32, i32, i32) {
    %c0_i32 = arith.constant 0 : i32
    %c0_i32_0 = arith.constant 0 : i32
    %c0_i32_1 = arith.constant 0 : i32
    return %arg0, %c0_i32, %c0_i32_0 : i32, i32, i32
  }
  func.func @transform_1(%arg0: i32) -> (i32, i32, i32) {
    %c0_i32 = arith.constant 0 : i32
    %c0_i32_0 = arith.constant 0 : i32
    %c0_i32_1 = arith.constant 0 : i32
    return %arg0, %c0_i32, %c0_i32_0 : i32, i32, i32
  }
  func.func @transform_2(%arg0: i32) -> (i32, i32, i32) {
    %c0_i32 = arith.constant 0 : i32
    %c0_i32_0 = arith.constant 0 : i32
    %c0_i32_1 = arith.constant 0 : i32
    return %arg0, %c0_i32, %c0_i32_0 : i32, i32, i32
  }
}

</mosaic_0001>

<bundles_post_ra>
// kernel: _lambda_.1
= control target key start
LH: loop header
LB: loop body
LE: loop exit
PB: predicated region body
PF: predicated region fallthrough
CT: control target
= control target key end

     0   :  { %s402_s9 = smov 0   ;;  %s436_s0 = inlined_call_operand.vmem [shape: f32[8,2,128], index: 0, kind: input, shape index: {}]   ;;  %s437_s1 = inlined_call_operand.vmem [shape: f32[8,2,128], index: 1, kind: input, shape index: {}]   ;;  %s438_s2 = inlined_call_operand.vmem [shape: f32[4,4,128], index: 2, kind: output, shape index: {}]  }
   0x1 LB: > { %s408_s10 = sadd.s32 4294967295, %s380_s9   ;;  %p353_p0 = scmp.ge.s32.totalorder %s380_s9, 1  ;;  %s380_s9 = sphi %s402_s9, %s12_s9  }
   0x2   : > { %p124_p1 = scmp.lt.s32.totalorder %s380_s9, 5 }
   0x4   : > { %p125_p2 = pnand %p353_p0, %p124_p1 }
   0x5   : > { %s354_s11 = sshll.u32 (!%p125_p2), %s408_s10, 1  ;;  %s382_s19 = smov (!%p125_p2), 16  }
   0x6   : > { %128 = sbr.rel (%p125_p2) target bundleno = 254 (0xfe), region = 28  ;;  %p151_p3 = scmp.lt.s32.totalorder (!%p125_p2), %s354_s11, 7 }
   0x7   : > { %s383_s20 = smov (!%p125_p2), 1   ;;  %s384_s21 = smov (!%p125_p2), 127  }
   0x8   : > { %s385_s22 = smov (!%p125_p2), 112   ;;  %p162_p4 = scmp.lt.s32.totalorder (!%p125_p2), %s408_s10, 3 }
   0xb   : > { %s440_s11 = smov (!%p151_p3, %s354_s11), 7  ;;  %vm199_vm0 = vcmask 1041536   ;;  %vm174_vm1 = vcmask 1041408   ;;  %s442_s10 = smov (!%p162_p4, %s408_s10), 3  ;;  %vm278_vm2 = vcmask 123905   ;;  %v226_v49 = vlaneseq }
   0xc   : > { %s355_s12 = sshll.u32 %s440_s11, 1  ;;  %s358_s23 = sshll.u32 %s442_s10, 2  ;;  %v386_v51 = vmov 0.0   ;;  %vm252_vm4 = vcmask 1033216   ;;  %vm214_vm5 = vcmask 909312   ;;  %vm263_vm6 = vcmask 1032192  }
   0xd   : > { %s154_s15 = scalar_lea.vmem %s436_s0, %s355_s12  ;;  %s160_s18 = scalar_lea.vmem %s437_s1, %s355_s12  ;;  %v227_v53 = vand.u32 127, %v226_v49 }
   0xe   : > { %v166_v0 = vld [vmem:[%s154_s15] sm:$0x3]  ;;  %v167_v3 = vld [vmem:[%s154_s15 + $0x2] sm:$0x3]  ;;  %s424_s26 = scalar_lea.vmem %s438_s2, %s358_s23 }
   0xf   : > { %v168_v1 = vld [vmem:[%s160_s18] sm:$0x3]  ;;  %v169_v4 = vld [vmem:[%s160_s18 + $0x2] sm:$0x3]  ;;  %198 = vst [vmem:[%s424_s26 + $0x1] sm:$0x1] %v386_v51 }
  0x10   : > { %v170_v2 = vsub.f32 %v166_v0, %v168_v1  ;;  %v171_v5 = vsub.f32 %v167_v3, %v169_v4  ;;  %251 = vst [vmem:[%s424_s26 + $0x2] sm:$0x1] %v386_v51  ;;  %v232_v54 = vand.u32 15, %v227_v53 }
  0x11   : > { %265 = vst [vmem:[%s424_s26 + $0x3] sm:$0x1] %v386_v51 }
  0x12   : > { %188 = vrot.lane.b32.xlu1 %v170_v2, %s382_s19  ;;  %216 = vrot.lane.b32.xlu0 %v170_v2, %s383_s20  ;;  %v267_v6 = vrot.slane %v171_v5, 7  ;;  %v266_v7 = vrot.slane %v170_v2, 7  ;;  %v173_v30 = vmul.f32 %v171_v5, %v171_v5  ;;  %v172_v31 = vmul.f32 %v170_v2, %v170_v2 }
  0x13   : > { %vm240_vm3 = vcmp.lt.s32.totalorder %v232_v54, 15 }
  0x14   : > { %v176_v32 = vsel %vm174_vm1, %v173_v30, 0.0  ;;  %v175_v33 = vsel %vm174_vm1, %v172_v31, 0.0 }
  0x15   : > { %v177_v34 = vadd.f32 %v176_v32, %v175_v33 }
  0x17   : > { %v178_v35 = vsel %vm174_vm1, %v177_v34, 0.0 }
  0x18   : > { %v179_v36 = vrot.slane %v178_v35, 4 }
  0x1a   : > { %190 = vrot.lane.b32.xlu1 %v171_v5, %s382_s19  ;;  %218 = vrot.lane.b32.xlu0 %v171_v5, %s383_s20  ;;  %v180_v37 = vadd.f32 %v179_v36, %v178_v35 }
  0x1c   : > { %v181_v40 = vrot.slane %v180_v37, 2 }
  0x1e   : > { %v182_v43 = vadd.f32 %v181_v40, %v180_v37 }
  0x20   : > { %v183_v46 = vrot.slane %v182_v43, 1 }
  0x22   : > { %270 = vrot.lane.b32.xlu1 %v267_v6, %s382_s19  ;;  %268 = vrot.lane.b32.xlu0 %v266_v7, %s382_s19  ;;  %v184_v52 = vadd.f32 %v183_v46, %v182_v43 }
  0x24   : > { %185 = vst [vmem:[%s424_s26] sm:$0x1] %v184_v52 }
  0x84   : > { %v189_v8 = vpop.permute.xlu1 %188  ;;  %v217_v9 = vpop.permute.xlu0 %216 }
  0x85   : > { %v222_v10 = vsub.f32 %v170_v2, %v217_v9  ;;  %v194_v12 = vsub.f32 %v170_v2, %v189_v8 }
  0x87   : > { %v224_v11 = vand.u32 2147483647, %v222_v10  ;;  %v196_v15 = vand.u32 2147483647, %v194_v12 }
  0x89   : > { %243 = vrot.lane.b32.xlu2 %v224_v11, %s384_s21  ;;  %v200_v20 = vsel %vm199_vm0, %v196_v15, 0.0 }
  0x8c   : > { %v191_v13 = vpop.permute.xlu1 %190  ;;  %v219_v14 = vpop.permute.xlu0 %218 }
  0x8d   : > { %v195_v16 = vsub.f32 %v171_v5, %v191_v13  ;;  %v223_v17 = vsub.f32 %v171_v5, %v219_v14 }
  0x8f   : > { %v197_v18 = vand.u32 2147483647, %v195_v16  ;;  %v225_v19 = vand.u32 2147483647, %v223_v17 }
  0x91   : > { %v201_v21 = vsel %vm199_vm0, %v197_v18, 0.0  ;;  %245 = vrot.lane.b32.xlu2 %v225_v19, %s384_s21 }
  0x92   : > { %v202_v22 = vadd.f32 %v201_v21, %v200_v20 }
  0x94   : > { %v203_v23 = vsel %vm199_vm0, %v202_v22, 0.0  ;;  %v271_v38 = vpop.permute.xlu1 %270  ;;  %v269_v39 = vpop.permute.xlu0 %268 }
  0x95   : > { %v204_v24 = vrot.slane %v203_v23, 4  ;;  %v275_v41 = vsub.f32 %v171_v5, %v271_v38  ;;  %v274_v42 = vsub.f32 %v170_v2, %v269_v39 }
  0x97   : > { %v205_v25 = vadd.f32 %v204_v24, %v203_v23  ;;  %v277_v44 = vand.u32 2147483647, %v275_v41  ;;  %v276_v45 = vand.u32 2147483647, %v274_v42 }
  0x99   : > { %v206_v26 = vrot.slane %v205_v25, 2  ;;  %v280_v47 = vsel %vm278_vm2, %v277_v44, 0.0  ;;  %v279_v48 = vsel %vm278_vm2, %v276_v45, 0.0 }
  0x9a   : > { %v281_v50 = vadd.f32 %v280_v47, %v279_v48 }
  0x9b   : > { %v207_v27 = vadd.f32 %v206_v26, %v205_v25 }
  0x9c   : > { %283 = vst.msk [vmem:[%s424_s26 + $0x2] sm:$0x2] %vm278_vm2, %v281_v50 }
  0x9d   : > { %v208_v28 = vrot.slane %v207_v27, 1 }
  0x9f   : > { %v209_v29 = vadd.f32 %v208_v28, %v207_v27 }
  0xa1   : > { %211 = vrot.lane.b32.xlu2 %v209_v29, %s385_s22 }
  0xe3   : > { %v244_v55 = vpop.permute.xlu2 %243 }
  0xe4   : > { %v249_v56 = vsel %vm240_vm3, %v244_v55, 0.0 }
  0xe5   : > { %v253_v59 = vsel %vm252_vm4, %v249_v56, 0.0 }
  0xeb   : > { %v246_v57 = vpop.permute.xlu2 %245 }
  0xec   : > { %v250_v58 = vsel %vm240_vm3, %v246_v57, 0.0 }
  0xed   : > { %v254_v60 = vsel %vm252_vm4, %v250_v58, 0.0 }
  0xee   : > { %v255_v61 = vadd.f32 %v254_v60, %v253_v59 }
  0xf0   : > { %v256_v62 = vsel %vm252_vm4, %v255_v61, 0.0 }
  0xf1   : > { %v257_v63 = vrot.slane %v256_v62, 4 }
  0xf3   : > { %v258_v0 = vadd.f32 %v257_v63, %v256_v62 }
  0xf5   : > { %v259_v1 = vrot.slane %v258_v0, 2 }
  0xf7   : > { %v260_v2 = vadd.f32 %v259_v1, %v258_v0 }
  0xf9   : > { %v261_v3 = vrot.slane %v260_v2, 1 }
  0xfb   : > { %v262_v4 = vadd.f32 %v261_v3, %v260_v2  ;;  %v212_v5 = vpop.permute.xlu2 %211 }
  0xfc   : > { %215 = vst.msk [vmem:[%s424_s26 + $0x1] sm:$0x1] %vm214_vm5, %v212_v5 }
  0xfd   : > { %264 = vst.msk [vmem:[%s424_s26 + $0x2] sm:$0x1] %vm263_vm6, %v262_v4 }
  0xfe PF: > { %s12_s9 = sadd.s32 1, %s380_s9  }
  0xff   : > { %p9_p5 = scmp.ge.s32.totalorder %s12_s9, 6  }
 0x101   :  { %11 = sbr.rel (!%p9_p5) target bundleno = 1 (0x1), region = 61 }

</bundles_post_ra>
